<compile_context>
chip_gen: v7x
topology: tpu7x:2x2x1
jax: 0.10.0
libtpu: 0.0.40
codegen_flags: <defaults>
</compile_context>

<pallas_src>
import jax
import jax.numpy as jnp
from jax.experimental import pallas as pl
from jax.experimental.pallas import tpu as pltpu


# ----------------------------- helpers ---------------------------------------


def _round_up(v, m):
    return -(-v // m) * m


def _vmem_capacity_bytes():
    """Physical VMEM bytes for this TPU generation (conservative fallback)."""
    try:
        info = pltpu.get_tpu_info()
        for attr in ("vmem_capacity_bytes", "vmem_size_bytes", "vmem_bytes"):
            v = getattr(info, attr, None)
            if v:
                return int(v)
    except Exception:
        pass
    return 64 * 1024 * 1024  # v7x per-TensorCore VMEM (smallest generation)


def _pick_spatial_tile(hw, cin, cout, in_bytes, out_bytes, vmem_budget):
    """Choose (TS, HW_pad): a lane-dense spatial tile sized from the VMEM budget.

    Phase-2 per-column footprint: double-buffered x tile + double-buffered out
    tile.  TS is a multiple of 128, capped at 4096 (per-step overhead becomes
    negligible well before that).
    """
    hw128 = _round_up(hw, 128)
    per_col = 2 * cin * in_bytes + 2 * cout * out_bytes
    fixed = 2 * cout * cin * in_bytes + 8 * cout * 4 + (1 << 20)  # W + vecs + slack
    cap = max(128, min(4096, (vmem_budget - fixed) // per_col))
    cap = (cap // 128) * 128
    if hw128 <= cap:
        return hw128, hw128  # single (possibly padded) tile
    # Largest multiple-of-128 divisor of hw128 that fits the cap.
    best_div = 128
    for cand in range(cap, 127, -128):
        if hw128 % cand == 0:
            best_div = cand
            break
    if best_div >= 1024:
        return best_div, hw128
    # No decent divisor: pad up to a multiple of a large tile if waste is small.
    for cand in (cap, cap // 2, cap // 4, cap // 8):
        cand = max(128, (cand // 128) * 128)
        padded = _round_up(hw128, cand)
        if padded - hw128 <= hw128 // 8:
            return cand, padded
    return best_div, hw128


# ----------------------------- kernels ----------------------------------------


def _input_moments_kernel(x_ref, sx_ref, sxx_ref):
    """Per-batch input moments: Sx += sum_cols(x), Sxx += x @ x^T (f32 accum).

    Output blocks are keyed on the batch grid axis only, so they act as
    resident accumulators along the (arbitrary) spatial axis.
    """
    s = pl.program_id(1)

    @pl.when(s == 0)
    def _init():
        sx_ref[...] = jnp.zeros_like(sx_ref)
        sxx_ref[...] = jnp.zeros_like(sxx_ref)

    x = x_ref[...]  # (Cin, TS) in matmul dtype
    sx_ref[...] += jnp.sum(x, axis=1, keepdims=True, dtype=jnp.float32)
    # Contract the spatial (lane) axis of x with itself on the MXU -> (Cin, Cin).
    sxx_ref[...] += jax.lax.dot_general(
        x, x, (((1,), (1,)), ((), ())), preferred_element_type=jnp.float32)


def _conv1x1_affine_relu_kernel(x_ref, w_ref, scale_ref, shift_ref, o_ref):
    """out_tile = relu((W @ x_tile) * scale + shift)  -- BN folded into affine."""
    y = jnp.dot(w_ref[...], x_ref[...], preferred_element_type=jnp.float32)
    o_ref[...] = jnp.maximum(y * scale_ref[...] + shift_ref[...],
                             0.0).astype(o_ref.dtype)


# ----------------------------- wrapper ----------------------------------------


def conv1x1_bn_relu(x, weight, gamma, beta, *, stride=1, groups=1, eps=1e-5,
                    matmul_dtype=jnp.bfloat16, out_dtype=None):
    """Conv1x1(bias=False) -> BatchNorm2d(train mode) -> ReLU.

    x:      (N, Cin, H, W) float32 (NCHW, as in PyTorch)
    weight: (Cout, Cin)    (the 1x1 kernel with trailing 1x1 dims squeezed)
    gamma, beta: (Cout,)   BatchNorm affine parameters

    matmul_dtype: dtype x/W are streamed/multiplied in (default bf16: halves
    HBM traffic on both passes; BN stats and the affine epilogue stay f32).
    Pass matmul_dtype=None to keep full f32 numerics.
    """
    assert groups == 1  # TODO(synk): grouped 1x1 conv (groups > 1) not implemented.
    if stride > 1:
        # TODO(synk): fold the stride into the x BlockSpec index_map instead of
        # this XLA pre-slice (rare path: OSNet's Conv1x1 uses stride=1).
        x = x[:, :, ::stride, ::stride]

    N, Cin, H, W = x.shape
    Cout = weight.shape[0]
    HW = H * W
    M = N * HW
    out_dtype = x.dtype if out_dtype is None else out_dtype
    mm_dtype = x.dtype if matmul_dtype is None else matmul_dtype

    in_bytes = jnp.dtype(mm_dtype).itemsize
    out_bytes = jnp.dtype(out_dtype).itemsize
    vmem_cap = _vmem_capacity_bytes()
    TS, HW_pad = _pick_spatial_tile(HW, Cin, Cout, in_bytes, out_bytes,
                                    vmem_budget=int(vmem_cap * 0.6))
    n_s = HW_pad // TS
    grid = (N, n_s)
    vmem_limit = int(min(vmem_cap * 0.75, 100 * 1024 * 1024))

    # Free reshape in NCHW layout; pad the spatial axis with zeros if needed
    # (zeros contribute nothing to Sx / Sxx; padded output columns are sliced off).
    x3 = x.reshape(N, Cin, HW).astype(mm_dtype)
    if HW_pad != HW:
        x3 = jnp.pad(x3, ((0, 0), (0, 0), (0, HW_pad - HW)))
    w = weight.astype(mm_dtype)

    x_spec = pl.BlockSpec((None, Cin, TS), lambda b, s: (b, 0, s))

    # ---- Phase 1: per-batch input moments (megacore-parallel over batch). ----
    stats_cost = pl.CostEstimate(
        flops=2 * Cin * Cin * N * HW_pad + Cin * N * HW_pad,
        transcendentals=0,
        bytes_accessed=N * Cin * HW_pad * in_bytes + N * Cin * (Cin + 1) * 4)

    sx_parts, sxx_parts = pl.pallas_call(
        _input_moments_kernel,
        grid=grid,
        in_specs=[x_spec],
        out_specs=(pl.BlockSpec((None, Cin, 1), lambda b, s: (b, 0, 0)),
                   pl.BlockSpec((None, Cin, Cin), lambda b, s: (b, 0, 0))),
        out_shape=(jax.ShapeDtypeStruct((N, Cin, 1), jnp.float32),
                   jax.ShapeDtypeStruct((N, Cin, Cin), jnp.float32)),
        compiler_params=pltpu.CompilerParams(
            dimension_semantics=("parallel", "arbitrary"),
            vmem_limit_bytes=vmem_limit),
        cost_estimate=stats_cost,
    )(x3)

    # ---- Tiny fold (plain JAX): input moments -> BN scale/shift. -------------
    wf = w.astype(jnp.float32)                     # same weights phase 2 multiplies
    sx = jnp.sum(sx_parts, axis=0)                 # (Cin, 1)
    sxx = jnp.sum(sxx_parts, axis=0)               # (Cin, Cin)
    inv_m = 1.0 / float(M)
    mean = (wf @ sx) * inv_m                       # (Cout, 1)  E[y]
    ey2 = jnp.sum((wf @ sxx) * wf, axis=1, keepdims=True) * inv_m   # E[y^2]
    # TODO(synk): compensated / pivoted accumulation if |mean| >> std.
    var = jnp.maximum(ey2 - mean * mean, 0.0)
    inv_std = jax.lax.rsqrt(var + float(eps))
    scale = gamma.reshape(Cout, 1).astype(jnp.float32) * inv_std
    shift = beta.reshape(Cout, 1).astype(jnp.float32) - mean * scale

    # ---- Phase 2: streaming matmul + folded-BN affine + ReLU. ----------------
    apply_cost = pl.CostEstimate(
        flops=2 * Cin * Cout * N * HW_pad + 3 * Cout * N * HW_pad,
        transcendentals=0,
        bytes_accessed=(N * Cin * HW_pad * in_bytes + Cout * Cin * in_bytes
                        + N * Cout * HW_pad * out_bytes))

    out3 = pl.pallas_call(
        _conv1x1_affine_relu_kernel,
        grid=grid,
        in_specs=[x_spec,
                  pl.BlockSpec((Cout, Cin), lambda b, s: (0, 0)),
                  pl.BlockSpec((Cout, 1), lambda b, s: (0, 0)),
                  pl.BlockSpec((Cout, 1), lambda b, s: (0, 0))],
        out_specs=pl.BlockSpec((None, Cout, TS), lambda b, s: (b, 0, s)),
        out_shape=jax.ShapeDtypeStruct((N, Cout, HW_pad), out_dtype),
        compiler_params=pltpu.CompilerParams(
            dimension_semantics=("parallel", "parallel"),
            vmem_limit_bytes=vmem_limit),
        cost_estimate=apply_cost,
    )(x3, w, scale, shift)

    if HW_pad != HW:
        out3 = out3[:, :, :HW]
    return out3.reshape(N, Cout, H, W)


# ----------------------------- reference & test -------------------------------


def _reference(x, weight, gamma, beta, eps=1e-5):
    """Pure-JAX reference: 1x1 conv -> train-mode BatchNorm2d -> ReLU."""
    y = jnp.einsum('nchw,oc->nohw', x, weight,
                   precision=jax.lax.Precision.HIGHEST)
    mean = jnp.mean(y, axis=(0, 2, 3), keepdims=True)
    var = jnp.mean((y - mean) ** 2, axis=(0, 2, 3), keepdims=True)
    y = (y - mean) * jax.lax.rsqrt(var + eps)
    y = y * gamma.reshape(1, -1, 1, 1) + beta.reshape(1, -1, 1, 1)
    return jnp.maximum(y, 0.0)


if __name__ == "__main__":
    key = jax.random.PRNGKey(0)

    def _make_case(case_key, N, Cin, Cout, H, W):
        k_x, k_w, k_g, k_b = jax.random.split(case_key, 4)
        x = jax.random.normal(k_x, (N, Cin, H, W), dtype=jnp.float32)
        # nn.Conv2d(Cin, Cout, 1, bias=False): weight (Cout, Cin, 1, 1) -> (Cout, Cin)
        weight = jax.random.normal(k_w, (Cout, Cin), dtype=jnp.float32) * 0.1
        gamma = 1.0 + 0.1 * jax.random.normal(k_g, (Cout,), dtype=jnp.float32)
        beta = 0.1 * jax.random.normal(k_b, (Cout,), dtype=jnp.float32)
        return x, weight, gamma, beta

    k1, k2, k3 = jax.random.split(key, 3)

    # 1) Small spec shape, full-f32 path -> tight tolerances (single 256-lane tile).
    x, w_, g_, b_ = _make_case(k1, N=2, Cin=4, Cout=8, H=16, W=16)
    out = jax.block_until_ready(
        conv1x1_bn_relu(x, w_, g_, b_, matmul_dtype=None))
    ref = _reference(x, w_, g_, b_)
    assert out.shape == ref.shape
    assert jnp.allclose(out, ref, atol=1e-3, rtol=1e-3), "f32 path mismatch"

    # 2) OSNet-like channels with H*W not a multiple of 128 -> exercises the
    #    spatial zero-padding path; default bf16 streaming -> loose tolerances.
    x, w_, g_, b_ = _make_case(k2, N=2, Cin=64, Cout=128, H=30, W=30)
    out = jax.block_until_ready(conv1x1_bn_relu(x, w_, g_, b_))
    ref = _reference(x, w_, g_, b_)
    diff = jnp.abs(out - ref)
    assert out.shape == ref.shape
    assert float(jnp.max(diff)) < 0.1 and float(jnp.mean(diff)) < 0.01, \
        "bf16 padded-case mismatch"

    # 3) Larger spatial extent -> exercises the multi-tile spatial grid with a
    #    VMEM-budgeted tile (bf16 streaming).
    x, w_, g_, b_ = _make_case(k3, N=2, Cin=48, Cout=96, H=96, W=96)
    out = jax.block_until_ready(conv1x1_bn_relu(x, w_, g_, b_))
    ref = _reference(x, w_, g_, b_)
    diff = jnp.abs(out - ref)
    assert out.shape == ref.shape
    assert float(jnp.max(diff)) < 0.1 and float(jnp.mean(diff)) < 0.01, \
        "bf16 multi-tile mismatch"

    print("KERNEL_OK")
</pallas_src>

<mosaic_0001>
module attributes {stable_mosaic.version = 11 : i64} {
  func.func @_input_moments_kernel(%arg0: i32, %arg1: i32, %arg2: memref<1x4x256xf32, #tpu.memory_space<vmem>>, %arg3: memref<1x4x1xf32, #tpu.memory_space<vmem>>, %arg4: memref<1x4x4xf32, #tpu.memory_space<vmem>>) attributes {dimension_semantics = [#tpu.dimension_semantics<parallel>, #tpu.dimension_semantics<arbitrary>], iteration_bounds = array<i64: 2, 1>, scalar_prefetch = 0 : i64, scratch_operands = 0 : i64, tpu.core_type = #tpu.core_type<tc>, window_params = [{transform_indices = @transform_0, window_bounds = array<i64: 1, 4, 256>}, {transform_indices = @transform_1, window_bounds = array<i64: 1, 4, 1>}, {transform_indices = @transform_2, window_bounds = array<i64: 1, 4, 4>}]} {
    %c0_i32 = arith.constant 0 : i32
    %0 = arith.cmpi eq, %arg1, %c0_i32 : i32
    %1 = arith.extui %0 : i1 to i32
    %c0_i32_0 = arith.constant 0 : i32
    %2 = arith.cmpi ne, %1, %c0_i32_0 : i32
    scf.if %2 {
      %cst_16 = arith.constant 0.000000e+00 : f32
      %20 = vector.broadcast %cst_16 : f32 to vector<4x1xf32>
      %c0_17 = arith.constant 0 : index
      %c0_18 = arith.constant 0 : index
      %c0_19 = arith.constant 0 : index
      %21 = vector.load %arg3[%c0_17, %c0_18, %c0_19] : memref<1x4x1xf32, #tpu.memory_space<vmem>>, vector<1x4x1xf32>
      %22 = vector.shape_cast %21 : vector<1x4x1xf32> to vector<4x1xf32>
      %23 = vector.shape_cast %20 : vector<4x1xf32> to vector<1x4x1xf32>
      tpu.vector_store %arg3[%c0_17, %c0_18, %c0_19], %23 {strides = array<i32>} : memref<1x4x1xf32, #tpu.memory_space<vmem>>, vector<1x4x1xf32>,
      %cst_20 = arith.constant 0.000000e+00 : f32
      %24 = vector.broadcast %cst_20 : f32 to vector<4x4xf32>
      %c0_21 = arith.constant 0 : index
      %c0_22 = arith.constant 0 : index
      %c0_23 = arith.constant 0 : index
      %25 = vector.load %arg4[%c0_21, %c0_22, %c0_23] : memref<1x4x4xf32, #tpu.memory_space<vmem>>, vector<1x4x4xf32>
      %26 = vector.shape_cast %25 : vector<1x4x4xf32> to vector<4x4xf32>
      %27 = vector.shape_cast %24 : vector<4x4xf32> to vector<1x4x4xf32>
      tpu.vector_store %arg4[%c0_21, %c0_22, %c0_23], %27 {strides = array<i32>} : memref<1x4x4xf32, #tpu.memory_space<vmem>>, vector<1x4x4xf32>,
    } else {
    }
    %c0 = arith.constant 0 : index
    %c0_1 = arith.constant 0 : index
    %c0_2 = arith.constant 0 : index
    %3 = vector.load %arg2[%c0, %c0_1, %c0_2] : memref<1x4x256xf32, #tpu.memory_space<vmem>>, vector<1x4x256xf32>
    %4 = vector.shape_cast %3 : vector<1x4x256xf32> to vector<4x256xf32>
    %c0_3 = arith.constant 0 : index
    %c0_4 = arith.constant 0 : index
    %c0_5 = arith.constant 0 : index
    %5 = vector.load %arg3[%c0_3, %c0_4, %c0_5] : memref<1x4x1xf32, #tpu.memory_space<vmem>>, vector<1x4x1xf32>
    %6 = vector.shape_cast %5 : vector<1x4x1xf32> to vector<4x1xf32>
    %cst = arith.constant dense<0.000000e+00> : vector<4xf32>
    %7 = vector.multi_reduction <add>, %4, %cst [1] : vector<4x256xf32> to vector<4xf32>
    %8 = vector.shape_cast %7 : vector<4xf32> to vector<4x1xf32>
    %9 = arith.addf %6, %8 : vector<4x1xf32>
    %c0_6 = arith.constant 0 : index
    %c0_7 = arith.constant 0 : index
    %c0_8 = arith.constant 0 : index
    %10 = vector.load %arg3[%c0_6, %c0_7, %c0_8] : memref<1x4x1xf32, #tpu.memory_space<vmem>>, vector<1x4x1xf32>
    %11 = vector.shape_cast %10 : vector<1x4x1xf32> to vector<4x1xf32>
    %12 = vector.shape_cast %9 : vector<4x1xf32> to vector<1x4x1xf32>
    tpu.vector_store %arg3[%c0_6, %c0_7, %c0_8], %12 {strides = array<i32>} : memref<1x4x1xf32, #tpu.memory_space<vmem>>, vector<1x4x1xf32>,
    %c0_9 = arith.constant 0 : index
    %c0_10 = arith.constant 0 : index
    %c0_11 = arith.constant 0 : index
    %13 = vector.load %arg4[%c0_9, %c0_10, %c0_11] : memref<1x4x4xf32, #tpu.memory_space<vmem>>, vector<1x4x4xf32>
    %14 = vector.shape_cast %13 : vector<1x4x4xf32> to vector<4x4xf32>
    %cst_12 = arith.constant dense<0.000000e+00> : vector<4x4xf32>
    %15 = tpu.matmul %4, %4, %cst_12 {dimension_numbers = #tpu.dot_dimension_numbers<[1], [1], [0], [0], [0, 0, 1, 0], [], []>} : vector<4x256xf32>, vector<4x256xf32>, vector<4x4xf32> -> vector<4x4xf32>
    %16 = arith.addf %14, %15 : vector<4x4xf32>
    %c0_13 = arith.constant 0 : index
    %c0_14 = arith.constant 0 : index
    %c0_15 = arith.constant 0 : index
    %17 = vector.load %arg4[%c0_13, %c0_14, %c0_15] : memref<1x4x4xf32, #tpu.memory_space<vmem>>, vector<1x4x4xf32>
    %18 = vector.shape_cast %17 : vector<1x4x4xf32> to vector<4x4xf32>
    %19 = vector.shape_cast %16 : vector<4x4xf32> to vector<1x4x4xf32>
    tpu.vector_store %arg4[%c0_13, %c0_14, %c0_15], %19 {strides = array<i32>} : memref<1x4x4xf32, #tpu.memory_space<vmem>>, vector<1x4x4xf32>,
    return
  }
  func.func @transform_0(%arg0: i32, %arg1: i32) -> (i32, i32, i32) {
    %c0_i32 = arith.constant 0 : i32
    %c0_i32_0 = arith.constant 0 : i32
    return %arg0, %c0_i32, %arg1 : i32, i32, i32
  }
  func.func @transform_1(%arg0: i32, %arg1: i32) -> (i32, i32, i32) {
    %c0_i32 = arith.constant 0 : i32
    %c0_i32_0 = arith.constant 0 : i32
    %c0_i32_1 = arith.constant 0 : i32
    return %arg0, %c0_i32, %c0_i32_0 : i32, i32, i32
  }
  func.func @transform_2(%arg0: i32, %arg1: i32) -> (i32, i32, i32) {
    %c0_i32 = arith.constant 0 : i32
    %c0_i32_0 = arith.constant 0 : i32
    %c0_i32_1 = arith.constant 0 : i32
    return %arg0, %c0_i32, %c0_i32_0 : i32, i32, i32
  }
}

</mosaic_0001>

<bundles_post_ra>
// kernel: tpu_custom_call.1
= control target key start
LH: loop header
LB: loop body
LE: loop exit
PB: predicated region body
PF: predicated region fallthrough
CT: control target
= control target key end

     0   :  { %8 = vsyncpa [#allocation3], 0  ;;  %s808_s0 = inlined_call_operand.hbm [shape: f32[2,4,256], index: 0, kind: input, shape index: {}]   ;;  %s809_s1 = inlined_call_operand.vmem [shape: f32[2,4,1], index: 1, kind: output, shape index: {0}]   ;;  %s810_s2 = inlined_call_operand.hbm [shape: f32[2,4,4], index: 2, kind: output, shape index: {1}]  }
   0x1   :  { %10 = vsyncpa [#allocation3 + $0x1], 0 }
   0x2   :  { %11 = vsyncpa [#allocation4], 0 }
   0x3   :  { %13 = vsyncpa [#allocation4 + $0x1], 0  ;;  %s622_s9 = smov 0   ;;  %s624_s10 = smov 0  }
   0x4   :  { %s626_s11 = smov 0   ;;  %s628_s12 = smov 0  }
   0x5   :  { %s630_s13 = smov 0   ;;  %s632_s14 = smov 0  }
   0x6 LB: > { %s410_s15 = sadd.s32 4294967295, %s602_s14   ;;  %s411_s16 = sadd.s32 4294967294, %s602_s14   ;;  %s602_s14 = sphi %s632_s14, %s19_s14   ;;  %s598_s13 = sphi %s630_s13, %s826_s13   ;;  %s594_s12 = sphi %s628_s12, %s825_s12   ;;  %s590_s11 = sphi %s626_s11, %s824_s11   ;;  %s586_s10 = sphi %s624_s10, %s823_s10   ;;  %s582_s9 = sphi %s622_s9, %s822_s9  }
   0x7   : > { %s31_s17 = sadd.s32 1, %s598_s13  ;;  %s40_s18 = sadd.s32 1, %s590_s11 }
   0x8   : > { %p33_p0 = scmp.ge.s32.totalorder %s31_s17, 2  ;;  %p47_p1 = scmp.ne.s32.totalorder %s590_s11, %s586_s10 }
   0x9   : > { %p48_p2 = scmp.eq.s32.totalorder %s602_s14, 0  ;;  %p53_p3 = scmp.ne.s32.totalorder %s586_s10, %s582_s9 }
   0xa   : > { %s828_s17 = smov (%p33_p0, %s31_s17), 0  ;;  %p54_p5 = scmp.eq.s32.totalorder %s410_s15, 0 }
   0xb   : > { %p663_p4 = por %p48_p2, %p47_p1  ;;  %s35_s20 = ssub.s32 %s598_s13, %s828_s17 }
   0xc   : > { %p103_p6 = scmp.eq.s32.totalorder %s410_s15, 1  ;;  %p38_p7 = scmp.eq.s32.totalorder %s35_s20, 0 }
   0xd   : > { %p669_p8 = por %p54_p5, %p53_p3  ;;  %p109_p10 = scmp.eq.s32.totalorder %s411_s16, 1 }
   0xe   : > { %p673_p9 = por %p103_p6, %p47_p1  ;;  %p438_p13 = scmp.lt.s32.totalorder %s602_s14, 2 }
   0xf   : > { %s678_s23 = scalar_select %p38_p7, %s590_s11, %s40_s18  }
  0x10   : > { %s814_s22 = scalar_select %p673_p9, 1, 0 }
  0x11   : > { %p680_p11 = por %p109_p10, %p53_p3  ;;  %s129_s25 = sand.u32 1, %s590_s11  }
  0x12   : > { %s414_s26 = sshll.u32 %s129_s25, 3  ;;  %s425_s27 = sshll.u32 %s598_s13, 7 }
  0x13   : > { %s815_s24 = scalar_select %p680_p11, 1, 0 }
  0x14   : > { %s691_s30 = scalar_lea.hbm %s808_s0, %s425_s27  ;;  %s133_s3 = scalar_lea.vmem [#allocation2], %s414_s26 }
  0x15   : > { %s143_s4 = sshll.u32 %s133_s3, 4  ;;  %p697_p0 = pnand %p438_p13, %p663_p4  ;;  %s693_s4 = int_to_ptr.vmem [resolvable:$true] %s143_s4 }
  0x16   : > { %s130_s6 = scalar_lea.sflag [#allocation3], %s129_s25  ;;  %s490_s7 = scalar_lea.hbm %s691_s30, 128 }
  0x17   : > { %p491_p3 = scmp.ne.s32.totalorder %s691_s30, %s490_s7  ;;  %p492_p5 = pneg %p697_p0 }
  0x18   : > { %s495_s16 = scalar_lea.hbm %s808_s0, 256  ;;  %p496_p4 = scmp.lt.u32.totalorder %s691_s30, %s808_s0 }
  0x19   : > { %p493_p6 = pnand %p492_p5, %p491_p3  ;;  %p497_p10 = scmp.lt.u32.totalorder %s495_s16, %s490_s7 }
  0x1a   : > { %p499_p12 = scmp.lt.u32.totalorder %s490_s7, %s691_s30 }
  0x1b   : > { %p494_p7 = pneg %p493_p6  ;;  %p498_p13 = por %p497_p10, %p496_p4 }
  0x1d   : > { %p500_p1 = por %p499_p12, %p498_p13 }
  0x1f   : > { %p501_p2 = pnand %p500_p1, %p494_p7 }
  0x21   : > { %504 = shalt.err (!%p501_p2)
}
  0x22   : > { %s505_s20 = scalar_lea.vmem %s693_s4, 128  ;;  %s604_s25 = smov [#allocation2]  }
  0x23   : > { %p506_p3 = scmp.ne.s32.totalorder %s693_s4, %s505_s20  ;;  %s510_s26 = sshll.u32 %s604_s25, 4  ;;  %s511_s26 = int_to_ptr.vmem [resolvable:$false] %s510_s26 }
  0x24   : > { %s512_s27 = scalar_lea.vmem %s511_s26, 256  ;;  %p513_p9 = scmp.lt.s32.totalorder %s693_s4, %s511_s26 }
  0x25   : > { %p508_p6 = pnand %p506_p3, %p492_p5  ;;  %p514_p4 = scmp.lt.s32.totalorder %s512_s27, %s505_s20 }
  0x27   : > { %p509_p11 = pneg %p508_p6  ;;  %p515_p10 = por %p514_p4, %p513_p9 }
  0x29   : > { %p516_p12 = pnand %p515_p10, %p509_p11 }
  0x2b   : > { %519 = shalt.err (!%p516_p12)
}
  0x2c   : > { %433 = dma.hbm_to_vmem [thread:$0]  (!%p697_p0), %s691_s30, 128, %s693_s4, %s130_s6  }
  0x2d   : > { %p817_p1 = scmp.lt.s32.totalorder %s602_s14, 3  ;;  %p818_p2 = scmp.ge.s32.totalorder %s602_s14, 1 }
  0x2f   : > { %p149_p5 = pnand %p818_p2, %p817_p1 }
  0x30   : > { %s733_s28 = sand.u32 (!%p149_p5), 1, %s586_s10  }
  0x31   : > { %152 = sbr.rel (%p149_p5) target bundleno = 292 (0x124), region = 24  ;;  %s418_s29 = sshll.u32 (!%p149_p5), %s733_s28, 3 }
  0x32   : > { %s155_s3 = scalar_lea.sflag (!%p149_p5), [#allocation3], %s733_s28  ;;  %s158_s7 = scalar_lea.vmem (!%p149_p5), [#allocation2], %s418_s29 }
  0x38   : > { %573 = dma.done.wait (%p669_p8), %s155_s3, 128  }
  0x39   : > { %575 = vsyncadd (%p669_p8), %s155_s3, 4294967168  ;;  %s419_s30 = sshll.u32 %s733_s28, 2  ;;  %vm194_vm0 = vcmask 27648   ;;  %v605_v0 = vmov 0.0   ;;  %vm201_vm1 = vcmask 1043456   ;;  %v196_v1 = vld [vmem:[%s158_s7] sm:$0xff] }
  0x3a   : > { %s742_s4 = scalar_lea.vmem [#allocation5], %s419_s30  ;;  %v199_v2 = vcombine.high %v196_v1, %v196_v1  ;;  %v202_v3 = vsel %vm201_vm1, %v196_v1, 0.0  ;;  %p184_p8 = scmp.lt.s32.totalorder %s594_s12, 1  ;;  %vm192_vm2 = vcmask 3072  }
  0x3b   : > { %195 = vst.msk [vmem:[%s742_s4] sm:$0xf] %vm194_vm0, %v605_v0  ;;  %s422_s16 = sshll.u32 %s594_s12, 6  ;;  %s305_s18 = sshll.u32 %s742_s4, 4  ;;  %s759_s18 = int_to_ptr.vmem [resolvable:$true] %s305_s18 }
  0x3c   : > { %211 = vmatprep.subr.mxu0 %v199_v2  ;;  %275 = vmatprep.mubr.f32.mxu0 %v199_v2  ;;  %v203_v4 = vsel %vm201_vm1, %v199_v2, 0.0  ;;  %s185_s21 = scalar_select %p184_p8, %s594_s12, 1 }
  0x3d   : > { %212 = vmatpush1.xpose.msra.mxu0 %v196_v1  ;;  %v204_v5 = vadd.f32 %v203_v4, %v202_v3  ;;  %s757_s25 = scalar_lea.hbm %s810_s2, %s422_s16  ;;  %s289_s26 = scalar_lea.sflag [#allocation4], %s733_s28 }
  0x3e   : > { %s420_s5 = sshll.u32 %s185_s21, 2  ;;  %s520_s27 = scalar_lea.vmem %s759_s18, 64 }
  0x3f   : > { %205 = vadd.xlane.f32.xlu0 %v204_v5  ;;  %s187_s15 = scalar_lea.vmem %s809_s1, %s420_s5  ;;  %p521_p9 = scmp.ne.s32.totalorder %s759_s18, %s520_s27 }
  0x40   : > { %276 = vmatmul.mubr.f32.vlgmr.msra.gmra.mrb[0].mxu0 %v196_v1  ;;  %193 = vst.msk [vmem:[%s187_s15] sm:$0xf] %vm192_vm2, %v605_v0  ;;  %p819_p11 = scmp.ne.s32.totalorder %s814_s22, 0  ;;  %s606_s12 = smov [#allocation5]  }
  0x41   : > { %s524_s29 = sshll.u32 %s606_s12, 4  ;;  %s525_s29 = int_to_ptr.vmem [resolvable:$false] %s524_s29 }
  0x42   : > { %v210_v9 = vld [vmem:[%s742_s4] sm:$0xf]  ;;  %p522_p0 = pnand %p521_p9, %p819_p11  ;;  %s526_s3 = scalar_lea.vmem %s525_s29, 128 }
  0x43   : > { %p527_p13 = scmp.lt.s32.totalorder %s759_s18, %s525_s29  ;;  %p528_p3 = scmp.lt.s32.totalorder %s526_s3, %s520_s27 }
  0x44   : > { %p523_p7 = pneg %p522_p0 }
  0x45   : > { %p529_p6 = por %p528_p3, %p527_p13 }
  0x47   : > { %v197_v6 = vld [vmem:[%s187_s15] sm:$0xf]  ;;  %p530_p4 = pnand %p529_p6, %p523_p7 }
  0xcc   : > { %v206_v7 = vpop.xlane.xlu0 %205 }
  0xcd   : > { %v207_v8 = vadd.f32 %v206_v7, %v197_v6 }
  0xcf   : > { %209 = vst.msk [vmem:[%s187_s15] sm:$0xf] %vm192_vm2, %v207_v8 }
 0x113   : > { %v277_v10 = vpop.f32.mrb[0].mxu0 }
 0x114   : > { %v281_v11 = vadd.f32 %v277_v10, %v210_v9  ;;  %v279_v12 = vpop.f32.mrb[1].mxu0 }
 0x116   : > { %283 = vst.msk [vmem:[%s742_s4] sm:$0xf] %vm194_vm0, %v281_v11 }
 0x117   : > { %533 = shalt.err (!%p530_p4)
}
 0x118   : > { %s534_s28 = scalar_lea.hbm %s757_s25, 64  ;;  %s538_s4 = scalar_lea.hbm %s810_s2, 128 }
 0x119   : > { %p535_p10 = scmp.ne.s32.totalorder %s757_s25, %s534_s28  ;;  %p539_p2 = scmp.lt.u32.totalorder %s757_s25, %s810_s2 }
 0x11a   : > { %p540_p5 = scmp.lt.u32.totalorder %s538_s4, %s534_s28  ;;  %p542_p9 = scmp.lt.u32.totalorder %s534_s28, %s757_s25 }
 0x11b   : > { %p536_p12 = pnand %p535_p10, %p819_p11 }
 0x11c   : > { %p541_p8 = por %p540_p5, %p539_p2 }
 0x11d   : > { %p537_p1 = pneg %p536_p12 }
 0x11e   : > { %p543_p0 = por %p542_p9, %p541_p8 }
 0x120   : > { %p544_p7 = pnand %p543_p0, %p537_p1 }
 0x122   : > { %547 = shalt.err (!%p544_p7)
}
 0x123   : > { %428 = dma.vmem_to_hbm [thread:$0]  (%p819_p11), %s759_s18, 64, %s757_s25, %s289_s26  }
 0x124 PF: > { %s324_s6 = sand.u32 1, %s582_s9   ;;  %p820_p13 = scmp.ne.s32.totalorder %s815_s24, 0 }
 0x125   : > { %p821_p3 = scmp.ge.s32.totalorder %s602_s14, 2  ;;  %s325_s8 = scalar_lea.sflag [#allocation4], %s324_s6 }
 0x127   : > { %p435_p6 = pnand %p821_p3, %p820_p13 }
 0x129   : > { %577 = dma.done.wait (!%p435_p6), %s325_s8, 64  }
 0x12a   : > { %579 = vsyncadd (!%p435_p6), %s325_s8, 4294967232  ;;  %s19_s14 = sadd.s32 1, %s602_s14   ;;  %s822_s9 = smov %s586_s10 }
 0x12b   : > { %p16_p4 = scmp.ge.s32.totalorder %s19_s14, 4   ;;  %s823_s10 = smov %s590_s11 }
 0x12c   : > { %s824_s11 = smov %s678_s23  ;;  %s825_s12 = smov %s598_s13 }
 0x12d   : > { %s826_s13 = smov %s828_s17  ;;  %18 = sbr.rel (!%p16_p4) target bundleno = 6 (0x6), region = 85 }
 0x134   :  { %330 = vsyncpa [#allocation3], 1 }
 0x135   :  { %332 = vsyncpa [#allocation3 + $0x1], 1 }
 0x136   :  { %333 = vsyncpa [#allocation4], 1 }
 0x137   :  { %335 = vsyncpa [#allocation4 + $0x1], 1 }

</bundles_post_ra>
